<compile_context>
chip_gen: v5e
topology: v5e:2x2
jax: 0.10.0
libtpu: 0.0.40
codegen_flags: <defaults>
</compile_context>

<pallas_src>
import functools
import math

import jax
import jax.numpy as jnp
from jax.experimental import pallas as pl
from jax.experimental.pallas import tpu as pltpu


def lstm_gate_kernel(h_ref, c_ref, w_ref, b_ref, out_ref, *, tb):
    # h_ref: (TM, D_in)   c_ref: (TM, H)   w_ref: (D_in, 3H)
    # b_ref: (S, 3H) f32  out_ref: (TM, H)   with TM = tb * S
    H = out_ref.shape[-1]

    # One fused gate matmul on the MXU, f32 accumulation.
    pre = jnp.dot(h_ref[...], w_ref[...], preferred_element_type=jnp.float32)

    # Per-position bias repeats every S rows; tile the small (S, 3H) constant
    # block in-kernel instead of shipping a (TM, 3H) operand through HBM/VMEM.
    bias = b_ref[...].astype(jnp.float32)
    if tb > 1:
        bias = jnp.tile(bias, (tb, 1))          # (TM, 3H)
    pre = pre + bias

    # Static lane slices of the fused (TM, 3H) pre-activation.
    i_t = jax.nn.sigmoid(pre[:, 0:H])
    f_t = jax.nn.sigmoid(pre[:, H:2 * H])
    z_t = jnp.tanh(pre[:, 2 * H:3 * H])

    c = c_ref[...].astype(jnp.float32)
    out_ref[...] = (f_t * c + i_t * z_t).astype(out_ref.dtype)


def _pick_tb(B, S, target_rows=512):
    """Pick TB = batch elements per grid step (TM = TB*S matmul rows).

    Constraints: TB*S <= target_rows and TB*S % 8 == 0 (sublane-aligned block).
    Preference:  at least 2 grid steps so both v7x TensorCores get work
                 (free on single-TC v5e/v6e).
    TB does NOT have to divide B; the wrapper zero-pads the batch, keeping
    every tile aligned to a batch boundary (required by the per-position bias).
    Fallback: TB = B (single full-extent block, always layout-legal).
    """
    cands = [tb for tb in range(1, B + 1)
             if tb * S <= target_rows and (tb * S) % 8 == 0]
    if not cands:
        return B
    multi = [tb for tb in cands if -(-B // tb) >= 2]
    return max(multi) if multi else max(cands)


def _const_spec(block_shape, index_map):
    """BlockSpec for a constant-index operand; single-buffered when supported."""
    try:
        return pl.BlockSpec(block_shape, index_map, pipeline_mode=pl.Buffered(1))
    except Exception:  # older JAX without pipeline_mode / Buffered
        return pl.BlockSpec(block_shape, index_map)


def lstm_gate(h_t, c_t, params, *, target_rows=512, matmul_dtype=jnp.bfloat16):
    B, S, D_in = h_t.shape
    H = c_t.shape[-1]
    out_dtype = c_t.dtype

    # --- Param prep (wrapper-side, once per call under jit) ------------------
    # Fuse the three gates into one (D_in, 3H) weight; fold `ones` into biases.
    W_cat = jnp.concatenate(
        [params["W_i"], params["W_f"], params["W_z"]], axis=1)        # (D_in, 3H)
    ones = params["ones"].astype(jnp.float32)
    b_cat = jnp.concatenate(
        [params["b_i"].astype(jnp.float32) - ones,
         params["b_f"].astype(jnp.float32) + ones,
         params["b_z"].astype(jnp.float32)], axis=1)                  # (S, 3H) f32

    # --- Row tiling: TB whole batch elements per grid step -------------------
    TB = _pick_tb(B, S, target_rows)
    n_steps = -(-B // TB)                 # ceil(B / TB)
    B_pad = n_steps * TB
    if B_pad != B:                        # pad batch; tiles stay batch-aligned
        h_t = jnp.pad(h_t, ((0, B_pad - B), (0, 0), (0, 0)))
        c_t = jnp.pad(c_t, ((0, B_pad - B), (0, 0), (0, 0)))
    TM = TB * S
    M = B_pad * S

    h2 = h_t.reshape(M, D_in)
    c2 = c_t.reshape(M, H)

    if matmul_dtype is not None:
        # bf16 (default) MXU operands, f32 accumulation; bias/activations/
        # combine stay f32 (v5e has no bf16 VPU/EUP path).
        h2 = h2.astype(matmul_dtype)
        W_cat = W_cat.astype(matmul_dtype)

    # --- VMEM budget -> explicit vmem_limit_bytes ----------------------------
    def nbytes(x):
        return x.size * x.dtype.itemsize

    est = (2 * TM * D_in * h2.dtype.itemsize                 # h, double-buffered
           + 2 * TM * H * c2.dtype.itemsize                  # c, double-buffered
           + 2 * TM * H * jnp.dtype(out_dtype).itemsize      # out, double-buffered
           + 2 * nbytes(W_cat)                               # weight (2x even if Buffered(1))
           + 2 * nbytes(b_cat)                               # bias
           + TM * 3 * H * 4)                                 # f32 pre-activation temp
    vmem_limit = int(min(64 << 20, max(2 * est, 8 << 20)))

    cost = pl.CostEstimate(
        flops=2 * M * D_in * 3 * H,
        transcendentals=3 * M * H,
        bytes_accessed=(nbytes(h2) + nbytes(c2) + nbytes(W_cat) + nbytes(b_cat)
                        + M * H * jnp.dtype(out_dtype).itemsize))

    kernel = functools.partial(lstm_gate_kernel, tb=TB)

    def build(single_buffer_constants):
        if single_buffer_constants:
            w_spec = _const_spec((D_in, 3 * H), lambda m: (0, 0))
            b_spec = _const_spec((S, 3 * H), lambda m: (0, 0))
        else:
            w_spec = pl.BlockSpec((D_in, 3 * H), lambda m: (0, 0))
            b_spec = pl.BlockSpec((S, 3 * H), lambda m: (0, 0))
        return pl.pallas_call(
            kernel,
            out_shape=jax.ShapeDtypeStruct((M, H), out_dtype),
            grid_spec=pltpu.PrefetchScalarGridSpec(
                num_scalar_prefetch=0,
                grid=(n_steps,),
                in_specs=[
                    pl.BlockSpec((TM, D_in), lambda m: (m, 0)),   # h rows (streamed)
                    pl.BlockSpec((TM, H), lambda m: (m, 0)),      # c rows (streamed)
                    w_spec,                                       # fused weight (constant)
                    b_spec,                                       # fused bias (constant)
                ],
                out_specs=pl.BlockSpec((TM, H), lambda m: (m, 0)),
            ),
            compiler_params=pltpu.CompilerParams(
                dimension_semantics=("parallel",),
                vmem_limit_bytes=vmem_limit),
            cost_estimate=cost,
        )

    try:
        out2 = build(True)(h2, c2, W_cat, b_cat)
    except Exception:
        # Fallback for JAX/Mosaic versions that reject single-buffered constants.
        out2 = build(False)(h2, c2, W_cat, b_cat)

    return out2.reshape(B_pad, S, H)[:B]


def xavier_uniform(key, shape, dtype=jnp.float32):
    # Matches torch.nn.init.xavier_uniform_ for a 2-D (fan_in, fan_out) tensor.
    fan_in, fan_out = shape
    bound = math.sqrt(6.0 / (fan_in + fan_out))
    return jax.random.uniform(key, shape, dtype, minval=-bound, maxval=bound)


def init_params(key, input_size, hidden_size, state_length, dtype=jnp.float32):
    keys = jax.random.split(key, 8)
    return {
        "W_i": xavier_uniform(keys[0], (input_size, hidden_size), dtype),
        "b_i": xavier_uniform(keys[1], (state_length, hidden_size), dtype),
        "W_f": xavier_uniform(keys[2], (input_size, hidden_size), dtype),
        "b_f": xavier_uniform(keys[3], (state_length, hidden_size), dtype),
        "W_z": xavier_uniform(keys[4], (input_size, hidden_size), dtype),
        "b_z": xavier_uniform(keys[5], (state_length, hidden_size), dtype),
        "W_o": xavier_uniform(keys[6], (input_size, hidden_size), dtype),    # unused in forward
        "b_o": xavier_uniform(keys[7], (state_length, hidden_size), dtype),  # unused in forward
        # Kernel folds whatever is in `ones` into the biases, so either the
        # PyTorch quirk (xavier-inited `ones`) or true ones stays exact.
        "ones": jnp.ones((state_length, hidden_size), dtype),
    }


def lstm_gate_reference(h_t, c_t, p):
    i_t = jax.nn.sigmoid(h_t @ p["W_i"] + p["b_i"] - p["ones"])
    f_t = jax.nn.sigmoid(h_t @ p["W_f"] + p["b_f"] + p["ones"])
    z_t = jnp.tanh(h_t @ p["W_z"] + p["b_z"])
    return f_t * c_t + i_t * z_t


if __name__ == "__main__":
    B, S, D_in, H = 2, 8, 32, 32   # batch, state_length, input_size, hidden_size

    key = jax.random.PRNGKey(0)
    k_params, k_h, k_c = jax.random.split(key, 3)

    params = init_params(k_params, D_in, H, S)
    h_t = jax.random.normal(k_h, (B, S, D_in), jnp.float32)
    c_t = jax.random.normal(k_c, (B, S, H), jnp.float32)

    ref = lstm_gate_reference(h_t, c_t, params)

    # Exact-precision path (f32 MXU operands): tight check.
    out_f32 = jax.block_until_ready(lstm_gate(h_t, c_t, params, matmul_dtype=None))
    assert out_f32.shape == (B, S, H)
    assert jnp.allclose(out_f32, ref, atol=1e-5, rtol=1e-5), "f32 mismatch vs reference"

    # Default path (bf16 MXU operands, f32 accumulate / activations): loose check.
    out_bf16 = jax.block_until_ready(lstm_gate(h_t, c_t, params))
    assert out_bf16.shape == (B, S, H)
    assert jnp.allclose(out_bf16, ref, atol=5e-2, rtol=5e-2), "bf16 mismatch vs reference"

    print("KERNEL_OK")
</pallas_src>

<mosaic_0001>
module attributes {stable_mosaic.version = 11 : i64} {
  func.func @lstm_gate_kernel(%arg0: i32, %arg1: memref<8x32xf32, #tpu.memory_space<vmem>>, %arg2: memref<8x32xf32, #tpu.memory_space<vmem>>, %arg3: memref<32x96xf32, #tpu.memory_space<vmem>>, %arg4: memref<8x96xf32, #tpu.memory_space<vmem>>, %arg5: memref<8x32xf32, #tpu.memory_space<vmem>>) attributes {dimension_semantics = [#tpu.dimension_semantics<parallel>], iteration_bounds = array<i64: 2>, scalar_prefetch = 0 : i64, scratch_operands = 0 : i64, tpu.core_type = #tpu.core_type<tc>, window_params = [{transform_indices = @transform_0, window_bounds = array<i64: 8, 32>}, {transform_indices = @transform_1, window_bounds = array<i64: 8, 32>}, {pipeline_mode = #tpu.pipeline_mode<synchronous>, transform_indices = @transform_2, window_bounds = array<i64: 32, 96>}, {pipeline_mode = #tpu.pipeline_mode<synchronous>, transform_indices = @transform_3, window_bounds = array<i64: 8, 96>}, {transform_indices = @transform_4, window_bounds = array<i64: 8, 32>}]} {
    %c0 = arith.constant 0 : index
    %c0_0 = arith.constant 0 : index
    %0 = vector.load %arg1[%c0, %c0_0] : memref<8x32xf32, #tpu.memory_space<vmem>>, vector<8x32xf32>
    %c0_1 = arith.constant 0 : index
    %c0_2 = arith.constant 0 : index
    %1 = vector.load %arg3[%c0_1, %c0_2] : memref<32x96xf32, #tpu.memory_space<vmem>>, vector<32x96xf32>
    %cst = arith.constant dense<0.000000e+00> : vector<8x96xf32>
    %2 = tpu.matmul %0, %1, %cst {dimension_numbers = #tpu.dot_dimension_numbers<[1], [0], [0], [1], [0, 0, 1, 1], [], []>} : vector<8x32xf32>, vector<32x96xf32>, vector<8x96xf32> -> vector<8x96xf32>
    %c0_3 = arith.constant 0 : index
    %c0_4 = arith.constant 0 : index
    %3 = vector.load %arg4[%c0_3, %c0_4] : memref<8x96xf32, #tpu.memory_space<vmem>>, vector<8x96xf32>
    %4 = arith.addf %2, %3 : vector<8x96xf32>
    %5 = vector.extract_strided_slice %4 {offsets = [0, 0], sizes = [8, 32], strides = [1, 1]} : vector<8x96xf32> to vector<8x32xf32>
    %6 = arith.negf %5 : vector<8x32xf32>
    %7 = math.exp %6 : vector<8x32xf32>
    %cst_5 = arith.constant 1.000000e+00 : f32
    %8 = vector.broadcast %cst_5 : f32 to vector<8x32xf32>
    %9 = arith.addf %8, %7 : vector<8x32xf32>
    %10 = arith.divf %8, %9 : vector<8x32xf32>
    %11 = vector.extract_strided_slice %4 {offsets = [0, 32], sizes = [8, 32], strides = [1, 1]} : vector<8x96xf32> to vector<8x32xf32>
    %12 = arith.negf %11 : vector<8x32xf32>
    %13 = math.exp %12 : vector<8x32xf32>
    %cst_6 = arith.constant 1.000000e+00 : f32
    %14 = vector.broadcast %cst_6 : f32 to vector<8x32xf32>
    %15 = arith.addf %14, %13 : vector<8x32xf32>
    %16 = arith.divf %14, %15 : vector<8x32xf32>
    %17 = vector.extract_strided_slice %4 {offsets = [0, 64], sizes = [8, 32], strides = [1, 1]} : vector<8x96xf32> to vector<8x32xf32>
    %18 = math.tanh %17 : vector<8x32xf32>
    %c0_7 = arith.constant 0 : index
    %c0_8 = arith.constant 0 : index
    %19 = vector.load %arg2[%c0_7, %c0_8] : memref<8x32xf32, #tpu.memory_space<vmem>>, vector<8x32xf32>
    %20 = arith.mulf %16, %19 : vector<8x32xf32>
    %21 = arith.mulf %10, %18 : vector<8x32xf32>
    %22 = arith.addf %20, %21 : vector<8x32xf32>
    %c0_9 = arith.constant 0 : index
    %c0_10 = arith.constant 0 : index
    %23 = vector.load %arg5[%c0_9, %c0_10] : memref<8x32xf32, #tpu.memory_space<vmem>>, vector<8x32xf32>
    tpu.vector_store %arg5[%c0_9, %c0_10], %22 {strides = array<i32>} : memref<8x32xf32, #tpu.memory_space<vmem>>, vector<8x32xf32>,
    return
  }
  func.func @transform_0(%arg0: i32) -> (i32, i32) {
    %c0_i32 = arith.constant 0 : i32
    %c0_i32_0 = arith.constant 0 : i32
    return %arg0, %c0_i32 : i32, i32
  }
  func.func @transform_1(%arg0: i32) -> (i32, i32) {
    %c0_i32 = arith.constant 0 : i32
    %c0_i32_0 = arith.constant 0 : i32
    return %arg0, %c0_i32 : i32, i32
  }
  func.func @transform_2(%arg0: i32) -> (i32, i32) {
    %c0_i32 = arith.constant 0 : i32
    %c0_i32_0 = arith.constant 0 : i32
    %c0_i32_1 = arith.constant 0 : i32
    return %c0_i32, %c0_i32_0 : i32, i32
  }
  func.func @transform_3(%arg0: i32) -> (i32, i32) {
    %c0_i32 = arith.constant 0 : i32
    %c0_i32_0 = arith.constant 0 : i32
    %c0_i32_1 = arith.constant 0 : i32
    return %c0_i32, %c0_i32_0 : i32, i32
  }
  func.func @transform_4(%arg0: i32) -> (i32, i32) {
    %c0_i32 = arith.constant 0 : i32
    %c0_i32_0 = arith.constant 0 : i32
    return %arg0, %c0_i32 : i32, i32
  }
}

module attributes {stable_mosaic.version = 11 : i64} {
  func.func @lstm_gate_kernel(%arg0: i32, %arg1: memref<8x32xf32, #tpu.memory_space<vmem>>, %arg2: memref<8x32xf32, #tpu.memory_space<vmem>>, %arg3: memref<32x96xf32, #tpu.memory_space<vmem>>, %arg4: memref<8x96xf32, #tpu.memory_space<vmem>>, %arg5: memref<8x32xf32, #tpu.memory_space<vmem>>) attributes {dimension_semantics = [#tpu.dimension_semantics<parallel>], iteration_bounds = array<i64: 2>, scalar_prefetch = 0 : i64, scratch_operands = 0 : i64, tpu.core_type = #tpu.core_type<tc>, window_params = [{transform_indices = @transform_0, window_bounds = array<i64: 8, 32>}, {transform_indices = @transform_1, window_bounds = array<i64: 8, 32>}, {pipeline_mode = #tpu.pipeline_mode<synchronous>, transform_indices = @transform_2, window_bounds = array<i64: 32, 96>}, {pipeline_mode = #tpu.pipeline_mode<synchronous>, transform_indices = @transform_3, window_bounds = array<i64: 8, 96>}, {transform_indices = @transform_4, window_bounds = array<i64: 8, 32>}]} {
    %c0 = arith.constant 0 : index
    %c0_0 = arith.constant 0 : index
    %0 = vector.load %arg1[%c0, %c0_0] : memref<8x32xf32, #tpu.memory_space<vmem>>, vector<8x32xf32>
    %c0_1 = arith.constant 0 : index
    %c0_2 = arith.constant 0 : index
    %1 = vector.load %arg3[%c0_1, %c0_2] : memref<32x96xf32, #tpu.memory_space<vmem>>, vector<32x96xf32>
    %cst = arith.constant dense<0.000000e+00> : vector<8x96xf32>
    %2 = tpu.matmul %0, %1, %cst {dimension_numbers = #tpu.dot_dimension_numbers<[1], [0], [0], [1], [0, 0, 1, 1], [], []>} : vector<8x32xf32>, vector<32x96xf32>, vector<8x96xf32> -> vector<8x96xf32>
    %c0_3 = arith.constant 0 : index
    %c0_4 = arith.constant 0 : index
    %3 = vector.load %arg4[%c0_3, %c0_4] : memref<8x96xf32, #tpu.memory_space<vmem>>, vector<8x96xf32>
    %4 = arith.addf %2, %3 : vector<8x96xf32>
    %5 = vector.extract_strided_slice %4 {offsets = [0, 0], sizes = [8, 32], strides = [1, 1]} : vector<8x96xf32> to vector<8x32xf32>
    %6 = arith.negf %5 : vector<8x32xf32>
    %7 = math.exp %6 : vector<8x32xf32>
    %cst_5 = arith.constant 1.000000e+00 : f32
    %8 = vector.broadcast %cst_5 : f32 to vector<8x32xf32>
    %9 = arith.addf %8, %7 : vector<8x32xf32>
    %10 = arith.divf %8, %9 : vector<8x32xf32>
    %11 = vector.extract_strided_slice %4 {offsets = [0, 32], sizes = [8, 32], strides = [1, 1]} : vector<8x96xf32> to vector<8x32xf32>
    %12 = arith.negf %11 : vector<8x32xf32>
    %13 = math.exp %12 : vector<8x32xf32>
    %cst_6 = arith.constant 1.000000e+00 : f32
    %14 = vector.broadcast %cst_6 : f32 to vector<8x32xf32>
    %15 = arith.addf %14, %13 : vector<8x32xf32>
    %16 = arith.divf %14, %15 : vector<8x32xf32>
    %17 = vector.extract_strided_slice %4 {offsets = [0, 64], sizes = [8, 32], strides = [1, 1]} : vector<8x96xf32> to vector<8x32xf32>
    %18 = math.tanh %17 : vector<8x32xf32>
    %c0_7 = arith.constant 0 : index
    %c0_8 = arith.constant 0 : index
    %19 = vector.load %arg2[%c0_7, %c0_8] : memref<8x32xf32, #tpu.memory_space<vmem>>, vector<8x32xf32>
    %20 = arith.mulf %16, %19 : vector<8x32xf32>
    %21 = arith.mulf %10, %18 : vector<8x32xf32>
    %22 = arith.addf %20, %21 : vector<8x32xf32>
    %c0_9 = arith.constant 0 : index
    %c0_10 = arith.constant 0 : index
    %23 = vector.load %arg5[%c0_9, %c0_10] : memref<8x32xf32, #tpu.memory_space<vmem>>, vector<8x32xf32>
    tpu.vector_store %arg5[%c0_9, %c0_10], %22 {strides = array<i32>} : memref<8x32xf32, #tpu.memory_space<vmem>>, vector<8x32xf32>,
    return
  }
  func.func @transform_0(%arg0: i32) -> (i32, i32) {
    %c0_i32 = arith.constant 0 : i32
    %c0_i32_0 = arith.constant 0 : i32
    return %arg0, %c0_i32 : i32, i32
  }
  func.func @transform_1(%arg0: i32) -> (i32, i32) {
    %c0_i32 = arith.constant 0 : i32
    %c0_i32_0 = arith.constant 0 : i32
    return %arg0, %c0_i32 : i32, i32
  }
  func.func @transform_2(%arg0: i32) -> (i32, i32) {
    %c0_i32 = arith.constant 0 : i32
    %c0_i32_0 = arith.constant 0 : i32
    %c0_i32_1 = arith.constant 0 : i32
    return %c0_i32, %c0_i32_0 : i32, i32
  }
  func.func @transform_3(%arg0: i32) -> (i32, i32) {
    %c0_i32 = arith.constant 0 : i32
    %c0_i32_0 = arith.constant 0 : i32
    %c0_i32_1 = arith.constant 0 : i32
    return %c0_i32, %c0_i32_0 : i32, i32
  }
  func.func @transform_4(%arg0: i32) -> (i32, i32) {
    %c0_i32 = arith.constant 0 : i32
    %c0_i32_0 = arith.constant 0 : i32
    return %arg0, %c0_i32 : i32, i32
  }
}

</mosaic_0001>

<bundles_post_ra>
// kernel: tpu_custom_call.1
= control target key start
LH: loop header
LB: loop body
LE: loop exit
PB: predicated region body
PF: predicated region fallthrough
CT: control target
= control target key end

     0   :  { %s1003_s0 = inlined_call_operand.hbm [shape: f32[16,32], index: 0, kind: input, shape index: {}]   ;;  %s1004_s1 = inlined_call_operand.hbm [shape: f32[16,32], index: 1, kind: input, shape index: {}]   ;;  %s1005_s2 = inlined_call_operand.hbm [shape: f32[32,96], index: 2, kind: input, shape index: {}]   ;;  %s1006_s3 = inlined_call_operand.hbm [shape: f32[8,96], index: 3, kind: input, shape index: {}]   ;;  %s1007_s4 = inlined_call_operand.hbm [shape: f32[16,32], index: 4, kind: output, shape index: {}]  }
   0x1   :  { %1008 = sst [smem:[#allocation17_spill]] %s1005_s2 }
   0x2   :  { %1009 = sst [smem:[#allocation18_spill]] %s1006_s3 }
   0x3   :  { %9 = vsyncpa [#allocation3], 0 }
   0x4   :  { %11 = vsyncpa [#allocation3 + $0x1], 0 }
   0x5   :  { %12 = vsyncpa [#allocation6], 0 }
   0x6   :  { %14 = vsyncpa [#allocation6 + $0x1], 0 }
   0x7   :  { %15 = vsyncpa [#allocation9], 0 }
   0x8   :  { %16 = vsyncpa [#allocation4], 0 }
   0x9   :  { %18 = vsyncpa [#allocation4 + $0x1], 0  ;;  %s820_s15 = smov 0   ;;  %s822_s16 = smov 0  }
   0xa   :  { %s824_s17 = smov 0   ;;  %s826_s18 = smov 0  }
   0xb LB: > { %s1010_s2 = sld [smem:[#allocation17_spill]]  ;;  %s844_s22 = sadd.s32 4294967295, %s786_s18   ;;  %s786_s18 = sphi %s826_s18, %s1024_s18   ;;  %s782_s17 = sphi %s824_s17, %s1023_s17   ;;  %s778_s16 = sphi %s822_s16, %s1022_s16   ;;  %s774_s15 = sphi %s820_s15, %s1021_s15  }
   0xc   : > { %p485_p0 = scmp.ge.s32.totalorder %s786_s18, 1  ;;  %p45_p1 = scmp.eq.s32.totalorder %s844_s22, 0 }
   0xd   : > { %p149_p2 = scmp.lt.s32.totalorder %s786_s18, 3  ;;  %s788_s24 = smov [#allocation7]  }
   0xe   : > { %s162_s25 = sshll.u32 %s788_s24, 4  ;;  %s1012_s3 = sld [smem:[#allocation18_spill]]  ;;  %s163_s25 = int_to_ptr.vmem [resolvable:$true] %s162_s25 }
   0xf   : > { %p849_p3 = pnand %p485_p0, %p149_p2  ;;  %s789_s29 = smov [#allocation8]  }
  0x10   : > { %s177_s30 = sshll.u32 %s789_s29, 4  ;;  %s790_s5 = smov 128   ;;  %s178_s30 = int_to_ptr.vmem [resolvable:$true] %s177_s30 }
  0x11   : > { %s160_s21 = sshll.u32 %s1010_s2, 4  ;;  %p519_p4 = pneg %p849_p3  ;;  %s161_s21 = int_to_ptr.hbm [resolvable:$true] %s160_s21 }
  0x12   : > { %s791_s6 = smov 8   ;;  %s484_s7 = sadd.s32 4294967294, %s786_s18  }
  0x13   : > { %p520_p6 = pnand %p519_p4, %p45_p1  ;;  %s863_s8 = sadd.s32 1, %s786_s18  }
  0x14   : > { %s175_s28 = sshll.u32 %s1012_s3, 4  ;;  %s28_s9 = ssub.s32 %s786_s18, %s863_s8  ;;  %s176_s28 = int_to_ptr.hbm [resolvable:$true] %s175_s28 }
  0x15   : > { %522 = dma.hbm_to_vmem [thread:$0]  (!%p520_p6), %s161_s21, 512, %s163_s25, [#allocation6], %s790_s5, %s790_s5, %s791_s6  }
  0x16   : > { %525 = dma.hbm_to_vmem [thread:$0]  (!%p520_p6), %s176_s28, 128, %s178_s30, [#allocation9]  }
  0x17   : > { %s31_s10 = sadd.s32 1, %s782_s17  ;;  %p29_p7 = scmp.eq.s32.totalorder %s28_s9, 0 }
  0x18   : > { %p38_p8 = scmp.ne.s32.totalorder %s782_s17, %s778_s16  ;;  %p39_p9 = scmp.eq.s32.totalorder %s786_s18, 0 }
  0x19   : > { %p44_p10 = scmp.ne.s32.totalorder %s778_s16, %s774_s15  ;;  %p136_p13 = scmp.eq.s32.totalorder %s844_s22, 1 }
  0x1a   : > { %s874_s11 = scalar_select %p29_p7, %s782_s17, %s31_s10  }
  0x1b   : > { %p876_p11 = por %p39_p9, %p38_p8  ;;  %p882_p12 = por %p45_p1, %p44_p10 }
  0x1c   : > { %1013 = sst [smem:[#allocation16_spill]] %s874_s11  ;;  %p142_p0 = scmp.eq.s32.totalorder %s484_s7, 1 }
  0x1d   : > { %p539_p2 = scmp.lt.s32.totalorder %s786_s18, 2  ;;  %s188_s14 = sand.u32 1, %s782_s17  }
  0x1e   : > { %p889_p4 = por %p136_p13, %p38_p8  ;;  %p893_p6 = por %p142_p0, %p44_p10 }
  0x1f   : > { %s897_s21 = sshll.u32 %s188_s14, 3  ;;  %s490_s24 = sshll.u32 %s786_s18, 3 }
  0x20   : > { %s196_s27 = scalar_lea.hbm %s1003_s0, %s490_s24  ;;  %s192_s28 = scalar_lea.vmem [#allocation2], %s897_s21 }
  0x21   : > { %s200_s29 = sshll.u32 %s192_s28, 4  ;;  %s198_s30 = sshll.u32 %s196_s27, 4  ;;  %s201_s29 = int_to_ptr.vmem [resolvable:$true] %s200_s29  ;;  %s199_s30 = int_to_ptr.hbm [resolvable:$true] %s198_s30 }
  0x22   : > { %p906_p7 = pnand %p539_p2, %p876_p11  ;;  %s215_s9 = scalar_lea.hbm %s1004_s1, %s490_s24 }
  0x23   : > { %s207_s10 = sand.u32 1, %s786_s18   ;;  %s189_s2 = scalar_lea.sflag [#allocation3], %s188_s14 }
  0x24   : > { %s648_s25 = sshra.s32 %s199_s30, 4  ;;  %p652_p9 = pneg %p906_p7  ;;  %s649_s25 = int_to_ptr.hbm [resolvable:$true] %s648_s25 }
  0x25   : > { %s650_s26 = scalar_lea.hbm %s649_s25, 8  ;;  %s655_s28 = scalar_lea.hbm %s1003_s0, 16 }
  0x26   : > { %p651_p8 = scmp.ne.s32.totalorder %s649_s25, %s650_s26  ;;  %p656_p13 = scmp.lt.s32.totalorder %s649_s25, %s1003_s0 }
  0x27   : > { %p657_p0 = scmp.lt.s32.totalorder %s655_s28, %s650_s26 }
  0x28   : > { %p653_p10 = pnand %p652_p9, %p651_p8 }
  0x29   : > { %p658_p2 = por %p657_p0, %p656_p13 }
  0x2a   : > { %p654_p11 = pneg %p653_p10 }
  0x2c   : > { %p659_p5 = pnand %p658_p2, %p654_p11 }
  0x2e   : > { %662 = shalt.err (!%p659_p5)
}
  0x2f   : > { %529 = dma.hbm_to_vmem [thread:$0]  (!%p906_p7), %s199_s30, 128, %s201_s29, %s189_s2  }
  0x30   : > { %s217_s14 = sshll.u32 %s215_s9, 4  ;;  %s211_s24 = scalar_lea.vmem [#allocation5], %s897_s21  ;;  %s218_s14 = int_to_ptr.hbm [resolvable:$true] %s217_s14 }
  0x31   : > { %s219_s3 = sshll.u32 %s211_s24, 4  ;;  %s208_s12 = scalar_lea.sflag [#allocation6], %s207_s10  ;;  %s220_s3 = int_to_ptr.vmem [resolvable:$true] %s219_s3 }
  0x32   : > { %s678_s27 = sshra.s32 %s218_s14, 4  ;;  %s685_s28 = scalar_lea.hbm %s1004_s1, 16  ;;  %s679_s27 = int_to_ptr.hbm [resolvable:$true] %s678_s27 }
  0x33   : > { %s680_s11 = scalar_lea.hbm %s679_s27, 8  ;;  %p686_p5 = scmp.lt.s32.totalorder %s679_s27, %s1004_s1 }
  0x34   : > { %p681_p8 = scmp.ne.s32.totalorder %s679_s27, %s680_s11  ;;  %p687_p13 = scmp.lt.s32.totalorder %s685_s28, %s680_s11 }
  0x36   : > { %p683_p10 = pnand %p681_p8, %p652_p9  ;;  %p688_p0 = por %p687_p13, %p686_p5 }
  0x38   : > { %p684_p11 = pneg %p683_p10 }
  0x3a   : > { %p689_p2 = pnand %p688_p0, %p684_p11 }
  0x3c   : > { %692 = shalt.err (!%p689_p2)
}
  0x3d   : > { %532 = dma.hbm_to_vmem [thread:$0]  (!%p906_p7), %s218_s14, 128, %s220_s3, %s208_s12  }
  0x3e   : > { %228 = sbr.rel (%p849_p3) target bundleno = 570 (0x23a), region = 36  ;;  %s942_s21 = sand.u32 (!%p849_p3), 1, %s778_s16  }
  0x3f   : > { %s945_s29 = sshll.u32 (!%p849_p3), %s942_s21, 3  ;;  %s231_s30 = scalar_lea.sflag (!%p849_p3), [#allocation3], %s942_s21 }
  0x40   : > { %s234_s11 = scalar_lea.vmem (!%p849_p3), [#allocation2], %s945_s29 }
  0x43   : > { %753 = dma.done.wait (%p882_p12), %s231_s30, 128  }
  0x44   : > { %755 = vsyncadd (%p882_p12), %s231_s30, 4294967168  ;;  %s240_s3 = sand.u32 1, %s844_s22   ;;  %s244_s5 = scalar_lea.vmem [#allocation5], %s945_s29 }
  0x45   : > { %s241_s23 = scalar_lea.sflag [#allocation6], %s240_s3 }
  0x46   : > { %757 = dma.done.wait (%p882_p12), %s241_s23, 128  }
  0x47   : > { %759 = vsyncadd (%p882_p12), %s241_s23, 4294967168 }
  0x48   : > { %761 = dma.done.wait (%p45_p1), [#allocation6], 512  }
  0x49   : > { %763 = vsyncadd (%p45_p1), [#allocation6], 4294966784 }
  0x4a   : > { %765 = dma.done.wait (%p45_p1), [#allocation9], 128  }
  0x4b   : > { %767 = vsyncadd (%p45_p1), [#allocation9], 4294967168  ;;  %v289_v0 = vld [vmem:[#allocation7 + $0x18] sm:$0xff]  ;;  %v288_v1 = vld [vmem:[#allocation7 + $0x10] sm:$0xff]  ;;  %vm291_vm0 = vcmask 261120   ;;  %s792_s13 = smov 64  }
  0x4c   : > { %307 = vmatpush.msra.mxu0 %v289_v0  ;;  %v287_v2 = vld [vmem:[#allocation7 + $0x8] sm:$0xff]  ;;  %v286_v3 = vld [vmem:[#allocation7] sm:$0xff]  ;;  %v335_v9 = vld [vmem:[%s244_s5] sm:$0xff]  ;;  %s793_s9 = smov 32   ;;  %s794_s10 = smov 96  }
  0x4d   : > { %v285_v4 = vld [vmem:[%s234_s11] sm:$0xff]  ;;  %s502_s7 = sshll.u32 %s844_s22, 3  ;;  %s284_s27 = scalar_lea.vmem [#allocation10], %s945_s29 }
  0x4e   : > { %308 = vmatpush.msra.mxu0 %v288_v1  ;;  %v290_v5 = vld [vmem:[#allocation8] sm:$0xff]  ;;  %s367_s12 = scalar_lea.hbm %s1007_s4, %s502_s7  ;;  %s369_s25 = sshll.u32 %s284_s27, 4  ;;  %s370_s25 = int_to_ptr.vmem [resolvable:$true] %s369_s25 }
  0x4f   : > { %s371_s26 = sshll.u32 %s367_s12, 4  ;;  %s357_s28 = scalar_lea.sflag [#allocation4], %s942_s21  ;;  %s372_s26 = int_to_ptr.hbm [resolvable:$true] %s371_s26 }
  0x50   : > { %309 = vmatpush.msra.mxu0 %v287_v2  ;;  %s722_s6 = sshra.s32 %s372_s26, 4  ;;  %s728_s11 = scalar_lea.hbm %s1007_s4, 16  ;;  %s723_s6 = int_to_ptr.hbm [resolvable:$true] %s722_s6 }
  0x51   : > { %s724_s2 = scalar_lea.hbm %s723_s6, 8  ;;  %p729_p7 = scmp.lt.s32.totalorder %s723_s6, %s1007_s4 }
  0x52   : > { %310 = vmatpush.msra.mxu0 %v286_v3  ;;  %p725_p1 = scmp.ne.s32.totalorder %s723_s6, %s724_s2  ;;  %p730_p9 = scmp.lt.s32.totalorder %s728_s11, %s724_s2 }
  0x53   : > { %499 = vmatmul.msk.f32.vlgmr.msra.gmra.mxu0 %vm291_vm0, %v285_v4 }
  0x54   : > { %p726_p3 = pnand %p725_p1, %p889_p4  ;;  %p731_p8 = por %p730_p9, %p729_p7 }
  0x56   : > { %p727_p12 = pneg %p726_p3 }
  0x58   : > { %p732_p10 = pnand %p731_p8, %p727_p12 }
  0xd0   : > { %v312_v6 = vpop.f32.mrf.mxu0 }
  0xd1   : > { %v313_v7 = vadd.f32 %v312_v6, %v290_v5 }
  0xd3   : > { %582 = vtanh.f32 %v313_v7  ;;  %v500_v10 = vmul.f32 -1.442695, %v313_v7 }
  0xd5   : > { %584 = vpow2.f32 %v500_v10 }
  0xd9   : > { %v583_v8 = vpop.eup %582 }
  0xda   : > { %342 = vrot.lane.b32.xlu0 %v583_v8, %s792_s13 }
  0xdb   : > { %v585_v11 = vpop.eup %584 }
  0xdc   : > { %v318_v12 = vadd.f32 1.0, %v585_v11 }
  0xde   : > { %586 = vrcp.f32 %v318_v12  ;;  %v330_v18 = vand.u32 2147483648, %v318_v12  ;;  %vm324_vm2 = vweird.f32 %v318_v12  ;;  %v328_v19 = vand.u32 2147483647, %v318_v12 }
  0xe0   : > { %v331_v21 = vor.u32 1.1754944e-38, %v330_v18  ;;  %vm329_vm4 = vcmp.eq.f32.partialorder %v328_v19, 8.507059e+37 }
  0xe2   : > { %337 = vrot.lane.b32.xlu0 %v335_v9, %s793_s9 }
  0xe4   : > { %v587_v13 = vpop.eup %586 }
  0xe5   : > { %v320_v14 = vmul.f32 %v587_v13, %v318_v12  ;;  %vm325_vm1 = vweird.f32 %v587_v13 }
  0xe6   : > { %vm326_vm3 = vmor %vm324_vm2, %vm325_vm1 }
  0xe7   : > { %v321_v15 = vsub.f32 1.0, %v320_v14 }
  0xe9   : > { %v322_v16 = vmul.f32 %v587_v13, %v321_v15 }
  0xeb   : > { %v323_v17 = vadd.f32 %v587_v13, %v322_v16 }
  0xed   : > { %v327_v20 = vsel %vm326_vm3, %v587_v13, %v323_v17 }
  0xee   : > { %v332_v23 = vsel %vm329_vm4, %v331_v21, %v327_v20 }
 0x14c   : > { %v343_v22 = vpop.permute.xlu0 %342 }
 0x14d   : > { %v345_v24 = vmul.f32 %v343_v22, %v332_v23 }
 0x14f   : > { %347 = vrot.lane.b32.xlu1 %v345_v24, %s793_s9 }
 0x154   : > { %v338_v25 = vpop.permute.xlu0 %337 }
 0x155   : > { %v340_v26 = vmul.f32 %v338_v25, %v332_v23 }
 0x1c1   : > { %v348_v27 = vpop.permute.xlu1 %347 }
 0x1c2   : > { %v350_v28 = vadd.f32 %v348_v27, %v340_v26 }
 0x1c4   : > { %352 = vrot.lane.b32.xlu1 %v350_v28, %s794_s10 }
 0x236   : > { %v353_v29 = vpop.permute.xlu1 %352 }
 0x237   : > { %355 = vst.msk [vmem:[%s284_s27] sm:$0xff] %vm291_vm0, %v353_v29 }
 0x238   : > { %735 = shalt.err (!%p732_p10)
}
 0x239   : > { %517 = dma.vmem_to_hbm [thread:$0]  (%p889_p4), %s370_s25, 128, %s372_s26, %s357_s28  }
 0x23a PF: > { %s383_s21 = sand.u32 1, %s774_s15   ;;  %p1019_p11 = scmp.ge.s32.totalorder %s786_s18, 2 }
 0x23b   : > { %s384_s23 = scalar_lea.sflag [#allocation4], %s383_s21 }
 0x23c   : > { %p534_p5 = pnand %p1019_p11, %p893_p6 }
 0x23e   : > { %p535_p13 = pneg %p534_p5 }
 0x240   : > { %769 = dma.done.wait (%p535_p13), %s384_s23, 128  }
 0x241   : > { %771 = vsyncadd (%p535_p13), %s384_s23, 4294967168  ;;  %s1020_s5 = sld [smem:[#allocation16_spill]]  ;;  %p21_p0 = scmp.ge.s32.totalorder %s863_s8, 4  }
 0x242   : > { %s1021_s15 = smov %s778_s16  ;;  %s1022_s16 = smov %s782_s17 }
 0x243   : > { %s1024_s18 = smov %s863_s8  ;;  %23 = sbr.rel (!%p21_p0) target bundleno = 11 (0xb), region = 102 }
 0x247   : > { %s1023_s17 = smov %s1020_s5 }
 0x248   :  { %390 = vsyncpa [#allocation3], 1 }
 0x249   :  { %392 = vsyncpa [#allocation3 + $0x1], 1 }
 0x24a   :  { %393 = vsyncpa [#allocation6], 1 }
 0x24b   :  { %395 = vsyncpa [#allocation6 + $0x1], 1 }
 0x24c   :  { %396 = vsyncpa [#allocation9], 1 }
 0x24d   :  { %397 = vsyncpa [#allocation4], 1 }
 0x24e   :  { %399 = vsyncpa [#allocation4 + $0x1], 1 }

// kernel: tpu_custom_call.1
= control target key start
LH: loop header
LB: loop body
LE: loop exit
PB: predicated region body
PF: predicated region fallthrough
CT: control target
= control target key end

     0   :  { %s1003_s0 = inlined_call_operand.hbm [shape: f32[16,32], index: 0, kind: input, shape index: {}]   ;;  %s1004_s1 = inlined_call_operand.hbm [shape: f32[16,32], index: 1, kind: input, shape index: {}]   ;;  %s1005_s2 = inlined_call_operand.hbm [shape: f32[32,96], index: 2, kind: input, shape index: {}]   ;;  %s1006_s3 = inlined_call_operand.hbm [shape: f32[8,96], index: 3, kind: input, shape index: {}]   ;;  %s1007_s4 = inlined_call_operand.hbm [shape: f32[16,32], index: 4, kind: output, shape index: {}]  }
   0x1   :  { %1008 = sst [smem:[#allocation17_spill]] %s1005_s2 }
   0x2   :  { %1009 = sst [smem:[#allocation18_spill]] %s1006_s3 }
   0x3   :  { %9 = vsyncpa [#allocation3], 0 }
   0x4   :  { %11 = vsyncpa [#allocation3 + $0x1], 0 }
   0x5   :  { %12 = vsyncpa [#allocation6], 0 }
   0x6   :  { %14 = vsyncpa [#allocation6 + $0x1], 0 }
   0x7   :  { %15 = vsyncpa [#allocation9], 0 }
   0x8   :  { %16 = vsyncpa [#allocation4], 0 }
   0x9   :  { %18 = vsyncpa [#allocation4 + $0x1], 0  ;;  %s820_s15 = smov 0   ;;  %s822_s16 = smov 0  }
   0xa   :  { %s824_s17 = smov 0   ;;  %s826_s18 = smov 0  }
   0xb LB: > { %s1010_s2 = sld [smem:[#allocation17_spill]]  ;;  %s844_s22 = sadd.s32 4294967295, %s786_s18   ;;  %s786_s18 = sphi %s826_s18, %s1024_s18   ;;  %s782_s17 = sphi %s824_s17, %s1023_s17   ;;  %s778_s16 = sphi %s822_s16, %s1022_s16   ;;  %s774_s15 = sphi %s820_s15, %s1021_s15  }
   0xc   : > { %p485_p0 = scmp.ge.s32.totalorder %s786_s18, 1  ;;  %p45_p1 = scmp.eq.s32.totalorder %s844_s22, 0 }
   0xd   : > { %p149_p2 = scmp.lt.s32.totalorder %s786_s18, 3  ;;  %s788_s24 = smov [#allocation7]  }
   0xe   : > { %s162_s25 = sshll.u32 %s788_s24, 4  ;;  %s1012_s3 = sld [smem:[#allocation18_spill]]  ;;  %s163_s25 = int_to_ptr.vmem [resolvable:$true] %s162_s25 }
   0xf   : > { %p849_p3 = pnand %p485_p0, %p149_p2  ;;  %s789_s29 = smov [#allocation8]  }
  0x10   : > { %s177_s30 = sshll.u32 %s789_s29, 4  ;;  %s790_s5 = smov 128   ;;  %s178_s30 = int_to_ptr.vmem [resolvable:$true] %s177_s30 }
  0x11   : > { %s160_s21 = sshll.u32 %s1010_s2, 4  ;;  %p519_p4 = pneg %p849_p3  ;;  %s161_s21 = int_to_ptr.hbm [resolvable:$true] %s160_s21 }
  0x12   : > { %s791_s6 = smov 8   ;;  %s484_s7 = sadd.s32 4294967294, %s786_s18  }
  0x13   : > { %p520_p6 = pnand %p519_p4, %p45_p1  ;;  %s863_s8 = sadd.s32 1, %s786_s18  }
  0x14   : > { %s175_s28 = sshll.u32 %s1012_s3, 4  ;;  %s28_s9 = ssub.s32 %s786_s18, %s863_s8  ;;  %s176_s28 = int_to_ptr.hbm [resolvable:$true] %s175_s28 }
  0x15   : > { %522 = dma.hbm_to_vmem [thread:$0]  (!%p520_p6), %s161_s21, 512, %s163_s25, [#allocation6], %s790_s5, %s790_s5, %s791_s6  }
  0x16   : > { %525 = dma.hbm_to_vmem [thread:$0]  (!%p520_p6), %s176_s28, 128, %s178_s30, [#allocation9]  }
  0x17   : > { %s31_s10 = sadd.s32 1, %s782_s17  ;;  %p29_p7 = scmp.eq.s32.totalorder %s28_s9, 0 }
  0x18   : > { %p38_p8 = scmp.ne.s32.totalorder %s782_s17, %s778_s16  ;;  %p39_p9 = scmp.eq.s32.totalorder %s786_s18, 0 }
  0x19   : > { %p44_p10 = scmp.ne.s32.totalorder %s778_s16, %s774_s15  ;;  %p136_p13 = scmp.eq.s32.totalorder %s844_s22, 1 }
  0x1a   : > { %s874_s11 = scalar_select %p29_p7, %s782_s17, %s31_s10  }
  0x1b   : > { %p876_p11 = por %p39_p9, %p38_p8  ;;  %p882_p12 = por %p45_p1, %p44_p10 }
  0x1c   : > { %1013 = sst [smem:[#allocation16_spill]] %s874_s11  ;;  %p142_p0 = scmp.eq.s32.totalorder %s484_s7, 1 }
  0x1d   : > { %p539_p2 = scmp.lt.s32.totalorder %s786_s18, 2  ;;  %s188_s14 = sand.u32 1, %s782_s17  }
  0x1e   : > { %p889_p4 = por %p136_p13, %p38_p8  ;;  %p893_p6 = por %p142_p0, %p44_p10 }
  0x1f   : > { %s897_s21 = sshll.u32 %s188_s14, 3  ;;  %s490_s24 = sshll.u32 %s786_s18, 3 }
  0x20   : > { %s196_s27 = scalar_lea.hbm %s1003_s0, %s490_s24  ;;  %s192_s28 = scalar_lea.vmem [#allocation2], %s897_s21 }
  0x21   : > { %s200_s29 = sshll.u32 %s192_s28, 4  ;;  %s198_s30 = sshll.u32 %s196_s27, 4  ;;  %s201_s29 = int_to_ptr.vmem [resolvable:$true] %s200_s29  ;;  %s199_s30 = int_to_ptr.hbm [resolvable:$true] %s198_s30 }
  0x22   : > { %p906_p7 = pnand %p539_p2, %p876_p11  ;;  %s215_s9 = scalar_lea.hbm %s1004_s1, %s490_s24 }
  0x23   : > { %s207_s10 = sand.u32 1, %s786_s18   ;;  %s189_s2 = scalar_lea.sflag [#allocation3], %s188_s14 }
  0x24   : > { %s648_s25 = sshra.s32 %s199_s30, 4  ;;  %p652_p9 = pneg %p906_p7  ;;  %s649_s25 = int_to_ptr.hbm [resolvable:$true] %s648_s25 }
  0x25   : > { %s650_s26 = scalar_lea.hbm %s649_s25, 8  ;;  %s655_s28 = scalar_lea.hbm %s1003_s0, 16 }
  0x26   : > { %p651_p8 = scmp.ne.s32.totalorder %s649_s25, %s650_s26  ;;  %p656_p13 = scmp.lt.s32.totalorder %s649_s25, %s1003_s0 }
  0x27   : > { %p657_p0 = scmp.lt.s32.totalorder %s655_s28, %s650_s26 }
  0x28   : > { %p653_p10 = pnand %p652_p9, %p651_p8 }
  0x29   : > { %p658_p2 = por %p657_p0, %p656_p13 }
  0x2a   : > { %p654_p11 = pneg %p653_p10 }
  0x2c   : > { %p659_p5 = pnand %p658_p2, %p654_p11 }
  0x2e   : > { %662 = shalt.err (!%p659_p5)
}
  0x2f   : > { %529 = dma.hbm_to_vmem [thread:$0]  (!%p906_p7), %s199_s30, 128, %s201_s29, %s189_s2  }
  0x30   : > { %s217_s14 = sshll.u32 %s215_s9, 4  ;;  %s211_s24 = scalar_lea.vmem [#allocation5], %s897_s21  ;;  %s218_s14 = int_to_ptr.hbm [resolvable:$true] %s217_s14 }
  0x31   : > { %s219_s3 = sshll.u32 %s211_s24, 4  ;;  %s208_s12 = scalar_lea.sflag [#allocation6], %s207_s10  ;;  %s220_s3 = int_to_ptr.vmem [resolvable:$true] %s219_s3 }
  0x32   : > { %s678_s27 = sshra.s32 %s218_s14, 4  ;;  %s685_s28 = scalar_lea.hbm %s1004_s1, 16  ;;  %s679_s27 = int_to_ptr.hbm [resolvable:$true] %s678_s27 }
  0x33   : > { %s680_s11 = scalar_lea.hbm %s679_s27, 8  ;;  %p686_p5 = scmp.lt.s32.totalorder %s679_s27, %s1004_s1 }
  0x34   : > { %p681_p8 = scmp.ne.s32.totalorder %s679_s27, %s680_s11  ;;  %p687_p13 = scmp.lt.s32.totalorder %s685_s28, %s680_s11 }
  0x36   : > { %p683_p10 = pnand %p681_p8, %p652_p9  ;;  %p688_p0 = por %p687_p13, %p686_p5 }
  0x38   : > { %p684_p11 = pneg %p683_p10 }
  0x3a   : > { %p689_p2 = pnand %p688_p0, %p684_p11 }
  0x3c   : > { %692 = shalt.err (!%p689_p2)
}
  0x3d   : > { %532 = dma.hbm_to_vmem [thread:$0]  (!%p906_p7), %s218_s14, 128, %s220_s3, %s208_s12  }
  0x3e   : > { %228 = sbr.rel (%p849_p3) target bundleno = 570 (0x23a), region = 36  ;;  %s942_s21 = sand.u32 (!%p849_p3), 1, %s778_s16  }
  0x3f   : > { %s945_s29 = sshll.u32 (!%p849_p3), %s942_s21, 3  ;;  %s231_s30 = scalar_lea.sflag (!%p849_p3), [#allocation3], %s942_s21 }
  0x40   : > { %s234_s11 = scalar_lea.vmem (!%p849_p3), [#allocation2], %s945_s29 }
  0x43   : > { %753 = dma.done.wait (%p882_p12), %s231_s30, 128  }
  0x44   : > { %755 = vsyncadd (%p882_p12), %s231_s30, 4294967168  ;;  %s240_s3 = sand.u32 1, %s844_s22   ;;  %s244_s5 = scalar_lea.vmem [#allocation5], %s945_s29 }
  0x45   : > { %s241_s23 = scalar_lea.sflag [#allocation6], %s240_s3 }
  0x46   : > { %757 = dma.done.wait (%p882_p12), %s241_s23, 128  }
  0x47   : > { %759 = vsyncadd (%p882_p12), %s241_s23, 4294967168 }
  0x48   : > { %761 = dma.done.wait (%p45_p1), [#allocation6], 512  }
  0x49   : > { %763 = vsyncadd (%p45_p1), [#allocation6], 4294966784 }
  0x4a   : > { %765 = dma.done.wait (%p45_p1), [#allocation9], 128  }
  0x4b   : > { %767 = vsyncadd (%p45_p1), [#allocation9], 4294967168  ;;  %v289_v0 = vld [vmem:[#allocation7 + $0x18] sm:$0xff]  ;;  %v288_v1 = vld [vmem:[#allocation7 + $0x10] sm:$0xff]  ;;  %vm291_vm0 = vcmask 261120   ;;  %s792_s13 = smov 64  }
  0x4c   : > { %307 = vmatpush.msra.mxu0 %v289_v0  ;;  %v287_v2 = vld [vmem:[#allocation7 + $0x8] sm:$0xff]  ;;  %v286_v3 = vld [vmem:[#allocation7] sm:$0xff]  ;;  %v335_v9 = vld [vmem:[%s244_s5] sm:$0xff]  ;;  %s793_s9 = smov 32   ;;  %s794_s10 = smov 96  }
  0x4d   : > { %v285_v4 = vld [vmem:[%s234_s11] sm:$0xff]  ;;  %s502_s7 = sshll.u32 %s844_s22, 3  ;;  %s284_s27 = scalar_lea.vmem [#allocation10], %s945_s29 }
  0x4e   : > { %308 = vmatpush.msra.mxu0 %v288_v1  ;;  %v290_v5 = vld [vmem:[#allocation8] sm:$0xff]  ;;  %s367_s12 = scalar_lea.hbm %s1007_s4, %s502_s7  ;;  %s369_s25 = sshll.u32 %s284_s27, 4  ;;  %s370_s25 = int_to_ptr.vmem [resolvable:$true] %s369_s25 }
  0x4f   : > { %s371_s26 = sshll.u32 %s367_s12, 4  ;;  %s357_s28 = scalar_lea.sflag [#allocation4], %s942_s21  ;;  %s372_s26 = int_to_ptr.hbm [resolvable:$true] %s371_s26 }
  0x50   : > { %309 = vmatpush.msra.mxu0 %v287_v2  ;;  %s722_s6 = sshra.s32 %s372_s26, 4  ;;  %s728_s11 = scalar_lea.hbm %s1007_s4, 16  ;;  %s723_s6 = int_to_ptr.hbm [resolvable:$true] %s722_s6 }
  0x51   : > { %s724_s2 = scalar_lea.hbm %s723_s6, 8  ;;  %p729_p7 = scmp.lt.s32.totalorder %s723_s6, %s1007_s4 }
  0x52   : > { %310 = vmatpush.msra.mxu0 %v286_v3  ;;  %p725_p1 = scmp.ne.s32.totalorder %s723_s6, %s724_s2  ;;  %p730_p9 = scmp.lt.s32.totalorder %s728_s11, %s724_s2 }
  0x53   : > { %499 = vmatmul.msk.f32.vlgmr.msra.gmra.mxu0 %vm291_vm0, %v285_v4 }
  0x54   : > { %p726_p3 = pnand %p725_p1, %p889_p4  ;;  %p731_p8 = por %p730_p9, %p729_p7 }
  0x56   : > { %p727_p12 = pneg %p726_p3 }
  0x58   : > { %p732_p10 = pnand %p731_p8, %p727_p12 }
  0xd0   : > { %v312_v6 = vpop.f32.mrf.mxu0 }
  0xd1   : > { %v313_v7 = vadd.f32 %v312_v6, %v290_v5 }
  0xd3   : > { %582 = vtanh.f32 %v313_v7  ;;  %v500_v10 = vmul.f32 -1.442695, %v313_v7 }
  0xd5   : > { %584 = vpow2.f32 %v500_v10 }
  0xd9   : > { %v583_v8 = vpop.eup %582 }
  0xda   : > { %342 = vrot.lane.b32.xlu0 %v583_v8, %s792_s13 }
  0xdb   : > { %v585_v11 = vpop.eup %584 }
  0xdc   : > { %v318_v12 = vadd.f32 1.0, %v585_v11 }
  0xde   : > { %586 = vrcp.f32 %v318_v12  ;;  %v330_v18 = vand.u32 2147483648, %v318_v12  ;;  %vm324_vm2 = vweird.f32 %v318_v12  ;;  %v328_v19 = vand.u32 2147483647, %v318_v12 }
  0xe0   : > { %v331_v21 = vor.u32 1.1754944e-38, %v330_v18  ;;  %vm329_vm4 = vcmp.eq.f32.partialorder %v328_v19, 8.507059e+37 }
  0xe2   : > { %337 = vrot.lane.b32.xlu0 %v335_v9, %s793_s9 }
  0xe4   : > { %v587_v13 = vpop.eup %586 }
  0xe5   : > { %v320_v14 = vmul.f32 %v587_v13, %v318_v12  ;;  %vm325_vm1 = vweird.f32 %v587_v13 }
  0xe6   : > { %vm326_vm3 = vmor %vm324_vm2, %vm325_vm1 }
  0xe7   : > { %v321_v15 = vsub.f32 1.0, %v320_v14 }
  0xe9   : > { %v322_v16 = vmul.f32 %v587_v13, %v321_v15 }
  0xeb   : > { %v323_v17 = vadd.f32 %v587_v13, %v322_v16 }
  0xed   : > { %v327_v20 = vsel %vm326_vm3, %v587_v13, %v323_v17 }
  0xee   : > { %v332_v23 = vsel %vm329_vm4, %v331_v21, %v327_v20 }
 0x14c   : > { %v343_v22 = vpop.permute.xlu0 %342 }
 0x14d   : > { %v345_v24 = vmul.f32 %v343_v22, %v332_v23 }
 0x14f   : > { %347 = vrot.lane.b32.xlu1 %v345_v24, %s793_s9 }
 0x154   : > { %v338_v25 = vpop.permute.xlu0 %337 }
 0x155   : > { %v340_v26 = vmul.f32 %v338_v25, %v332_v23 }
 0x1c1   : > { %v348_v27 = vpop.permute.xlu1 %347 }
 0x1c2   : > { %v350_v28 = vadd.f32 %v348_v27, %v340_v26 }
 0x1c4   : > { %352 = vrot.lane.b32.xlu1 %v350_v28, %s794_s10 }
 0x236   : > { %v353_v29 = vpop.permute.xlu1 %352 }
 0x237   : > { %355 = vst.msk [vmem:[%s284_s27] sm:$0xff] %vm291_vm0, %v353_v29 }
 0x238   : > { %735 = shalt.err (!%p732_p10)
}
 0x239   : > { %517 = dma.vmem_to_hbm [thread:$0]  (%p889_p4), %s370_s25, 128, %s372_s26, %s357_s28  }
 0x23a PF: > { %s383_s21 = sand.u32 1, %s774_s15   ;;  %p1019_p11 = scmp.ge.s32.totalorder %s786_s18, 2 }
 0x23b   : > { %s384_s23 = scalar_lea.sflag [#allocation4], %s383_s21 }
 0x23c   : > { %p534_p5 = pnand %p1019_p11, %p893_p6 }
 0x23e   : > { %p535_p13 = pneg %p534_p5 }
 0x240   : > { %769 = dma.done.wait (%p535_p13), %s384_s23, 128  }
 0x241   : > { %771 = vsyncadd (%p535_p13), %s384_s23, 4294967168  ;;  %s1020_s5 = sld [smem:[#allocation16_spill]]  ;;  %p21_p0 = scmp.ge.s32.totalorder %s863_s8, 4  }
 0x242   : > { %s1021_s15 = smov %s778_s16  ;;  %s1022_s16 = smov %s782_s17 }
 0x243   : > { %s1024_s18 = smov %s863_s8  ;;  %23 = sbr.rel (!%p21_p0) target bundleno = 11 (0xb), region = 102 }
 0x247   : > { %s1023_s17 = smov %s1020_s5 }
 0x248   :  { %390 = vsyncpa [#allocation3], 1 }
 0x249   :  { %392 = vsyncpa [#allocation3 + $0x1], 1 }
 0x24a   :  { %393 = vsyncpa [#allocation6], 1 }
 0x24b   :  { %395 = vsyncpa [#allocation6 + $0x1], 1 }
 0x24c   :  { %396 = vsyncpa [#allocation9], 1 }
 0x24d   :  { %397 = vsyncpa [#allocation4], 1 }
 0x24e   :  { %399 = vsyncpa [#allocation4 + $0x1], 1 }

</bundles_post_ra>
